<compile_context>
chip_gen: v7x
topology: tpu7x:2x2x1
jax: 0.10.0
libtpu: 0.0.40
codegen_flags: <defaults>
</compile_context>

<pallas_src>
import functools

import jax
import jax.numpy as jnp
from jax import lax
from jax.experimental import pallas as pl
from jax.experimental.pallas import tpu as pltpu


# ---------------------------------------------------------------------------
# Kernel 1: scores_t[j, i] = <b_j, a_i>, running max / argmax over the b (t2)
# axis.  Grid: (batch [parallel], t1-blocks [parallel], t2-blocks [arbitrary]).
# The two outputs are revisited across the t2 axis and act as accumulators.
# ---------------------------------------------------------------------------
def _scores_kernel(a_ref, b_ref, max_ref, idx_ref, *, t2_total, cast_bf16):
    k = pl.program_id(2)
    bt2 = b_ref.shape[0]

    @pl.when(k == 0)
    def _init():
        max_ref[...] = jnp.full(max_ref.shape, -jnp.inf, dtype=max_ref.dtype)
        idx_ref[...] = jnp.zeros(idx_ref.shape, dtype=idx_ref.dtype)

    a_v = a_ref[...]
    b_v = b_ref[...]
    if cast_bf16:
        # Optional accuracy/perf tradeoff: scores only feed max/argmax/ranking.
        a_v = a_v.astype(jnp.bfloat16)
        b_v = b_v.astype(jnp.bfloat16)

    # Lane axis carries the a-token index -> the reductions below produce
    # lane-dense (1, bt1) rows.  NT form maps to the MXU transposed-rhs path.
    scores_t = lax.dot_general(b_v, a_v, (((1,), (1,)), ((), ())),
                               preferred_element_type=jnp.float32)   # (bt2, bt1)

    # Global b-token index per row; mask rows past t2 (ragged last block).
    row = lax.broadcasted_iota(jnp.int32, scores_t.shape, 0) + k * bt2
    scores_t = jnp.where(row < t2_total, scores_t, -jnp.inf)

    blk_max = jnp.max(scores_t, axis=0, keepdims=True)               # (1, bt1)
    blk_idx = jnp.min(jnp.where(scores_t >= blk_max, row, t2_total),
                      axis=0, keepdims=True)                         # (1, bt1)

    run_max = max_ref[...]
    better = blk_max > run_max        # strict ">" keeps first-occurrence ties
    max_ref[...] = jnp.where(better, blk_max, run_max)
    idx_ref[...] = jnp.where(better, blk_idx, idx_ref[...])


# ---------------------------------------------------------------------------
# Kernel 2: scatter_reduce(mean, include_self=True) of the r source rows into
# b, fused with the output assembly (unm rows + merged b rows).
# ---------------------------------------------------------------------------
def _merge_body(unm_ref, b_ref, asrc_ref, dst_ref, inv_ref, o_ref):
    t2, r = b_ref.shape[0], asrc_ref.shape[0]
    dt = b_ref.dtype

    # new_b[d] = (b[d] + sum_{j: dst[j]==d} a_src[j]) * inv[d]
    # via a tiny (t2, r) one-hot and a plain NN matmul (no transposes).
    sm = (lax.broadcasted_iota(jnp.int32, (t2, r), 0) == dst_ref[...]).astype(dt)
    sums = lax.dot_general(sm, asrc_ref[...], (((1,), (0,)), ((), ())),
                           preferred_element_type=jnp.float32)       # (t2, cb)
    new_b = (b_ref[...].astype(jnp.float32) + sums) * inv_ref[...]

    u = 0
    if unm_ref is not None:
        u = unm_ref.shape[0]
        # NOTE: u is in general not a multiple of 8, so these are masked
        # sublane stores -- inherent to the [unm; new_b] output layout.
        o_ref[pl.ds(0, u), :] = unm_ref[...].astype(o_ref.dtype)
    o_ref[pl.ds(u, t2), :] = new_b.astype(o_ref.dtype)


def _merge_kernel(unm_ref, b_ref, asrc_ref, dst_ref, inv_ref, o_ref):
    _merge_body(unm_ref, b_ref, asrc_ref, dst_ref, inv_ref, o_ref)


def _merge_kernel_no_unm(b_ref, asrc_ref, dst_ref, inv_ref, o_ref):
    _merge_body(None, b_ref, asrc_ref, dst_ref, inv_ref, o_ref)


# ---------------------------------------------------------------------------
# Helpers
# ---------------------------------------------------------------------------
def _vmem_capacity_bytes():
    try:
        return int(pltpu.get_tpu_info().vmem_capacity_bytes)
    except Exception:
        return 64 * 1024 * 1024            # conservative (v7x per-TC VMEM)


def _compiler_params(dim_semantics, est_vmem_bytes, vmem_cap):
    kwargs = dict(dimension_semantics=dim_semantics)
    want = int(2 * est_vmem_bytes)         # 2x headroom on a rough estimate
    if want > 16 * 1024 * 1024:
        # Cap below physical VMEM to leave room for Mosaic internal scratch.
        kwargs["vmem_limit_bytes"] = min(want, int(vmem_cap * 3 // 4))
    return pltpu.CompilerParams(**kwargs)


def _shrink_128(bt):
    return max(128, ((bt // 2) // 128) * 128)


def _pick_scores_blocks(t1, t2, c, itemsize, budget):
    """Block sizes for the scores kernel: whole dim if small, else a multiple
    of 128 shrunk until the per-step VMEM footprint fits the budget."""
    def est(b1, b2):
        return 2 * (b1 + b2) * c * itemsize + 3 * b1 * b2 * 4 + 4 * b1 * 8
    bt1 = t1 if t1 <= 512 else 512
    bt2 = t2 if t2 <= 512 else 512
    while est(bt1, bt2) > budget:
        if bt2 > 128 and bt2 % 128 == 0 and bt2 >= bt1:
            bt2 = _shrink_128(bt2)
        elif bt1 > 128 and bt1 % 128 == 0:
            bt1 = _shrink_128(bt1)
        elif bt2 > 128 and bt2 % 128 == 0:
            bt2 = _shrink_128(bt2)
        else:
            break
    return bt1, bt2


def _pick_c_block(c, u, t2, r, itemsize, budget):
    """Prefer whole-c tiles (single-TC chips want the full MXU N dimension);
    split c only when the per-step footprint exceeds the VMEM budget."""
    def est(cb):
        io = ((u + t2 + r) + (u + t2)) * cb * itemsize   # in + out tiles
        tmp = 2 * t2 * cb * 4 + t2 * r * itemsize + t2 * 8
        return 2 * io + tmp                              # double buffered
    if c % 128 != 0 or est(c) <= budget:
        return c
    for cand in (2048, 1024, 512, 256, 128):
        if cand < c and c % cand == 0 and est(cand) <= budget:
            return cand
    return 128


# ---------------------------------------------------------------------------
# Wrapper
# ---------------------------------------------------------------------------
def token_merging(x, r, *, cast_scores_to_bf16=False):
    """Pallas implementation of TokenMerging.forward.  x: [n, s, c]."""
    n, s, c = x.shape
    r = int(min(r, s // 2))
    if r <= 0:
        return x
    t1 = (s + 1) // 2
    t2 = s // 2
    u = t1 - r
    itemsize = jnp.dtype(x.dtype).itemsize
    vmem_cap = _vmem_capacity_bytes()
    budget = int(vmem_cap * 0.45)

    # One-time de-interleave: enables clean BlockSpec tiling in both kernels,
    # avoids repeated stride-2 sublane unpacking on packed dtypes, and is
    # reused by the pure-data-movement gathers below.
    a = x[:, ::2, :]                                                  # (n, t1, c)
    b = x[:, 1::2, :]                                                 # (n, t2, c)

    # --- Kernel 1: per-a-token max / argmax over b tokens -------------------
    bt1, bt2 = _pick_scores_blocks(t1, t2, c, itemsize, budget)
    nt1 = pl.cdiv(t1, bt1)
    nt2 = pl.cdiv(t2, bt2)
    est1_bytes = 2 * (bt1 + bt2) * c * itemsize + 3 * bt1 * bt2 * 4
    cast_bf16 = bool(cast_scores_to_bf16 and x.dtype == jnp.float32)
    node_max, node_idx = pl.pallas_call(
        functools.partial(_scores_kernel, t2_total=t2, cast_bf16=cast_bf16),
        grid=(n, nt1, nt2),
        in_specs=[pl.BlockSpec((None, bt1, c), lambda i, j, k: (i, j, 0)),
                  pl.BlockSpec((None, bt2, c), lambda i, j, k: (i, 0, k))],
        out_specs=(pl.BlockSpec((None, 1, bt1), lambda i, j, k: (i, 0, j)),
                   pl.BlockSpec((None, 1, bt1), lambda i, j, k: (i, 0, j))),
        out_shape=(jax.ShapeDtypeStruct((n, 1, t1), jnp.float32),
                   jax.ShapeDtypeStruct((n, 1, t1), jnp.int32)),
        compiler_params=_compiler_params(("parallel", "parallel", "arbitrary"),
                                         est1_bytes, vmem_cap),
    )(a, b)
    node_max = node_max[:, 0, :]                                      # (n, t1)
    node_idx = node_idx[:, 0, :]                                      # (n, t1)

    # --- Glue: data-dependent ordering + pure data movement -----------------
    edge_idx = jnp.argsort(-node_max, axis=-1)
    unm_idx = edge_idx[:, r:].astype(jnp.int32)                       # (n, u)
    src_idx = edge_idx[:, :r].astype(jnp.int32)                       # (n, r)
    dst_idx = jnp.take_along_axis(node_idx, src_idx, axis=-1).astype(jnp.int32)

    # Row gathers are plain data movement (no O(t1*u*c) one-hot MXU gathers).
    unm = jnp.take_along_axis(a, unm_idx[..., None], axis=1)          # (n, u, c)
    a_src = jnp.take_along_axis(a, src_idx[..., None], axis=1)        # (n, r, c)

    # Hoisted scatter-mean normalizer: 1 / (1 + |{j : dst_j == d}|).
    counts = jnp.sum(
        (dst_idx[:, :, None] ==
         jnp.arange(t2, dtype=jnp.int32)[None, None, :]).astype(jnp.float32),
        axis=1)                                                       # (n, t2)
    inv = (1.0 / (1.0 + counts)).reshape(n, t2, 1)

    # --- Kernel 2: scatter-mean into b, fused with the output concat --------
    c_blk = _pick_c_block(c, u, t2, r, itemsize, budget)
    n_cb = c // c_blk
    est2_bytes = (((u + t2 + r) + (u + t2)) * c_blk * itemsize) * 2 \
        + 2 * t2 * c_blk * 4

    in_specs = []
    args = []
    if u > 0:
        in_specs.append(pl.BlockSpec((None, u, c_blk), lambda i, j: (i, 0, j)))
        args.append(unm)
    in_specs += [pl.BlockSpec((None, t2, c_blk), lambda i, j: (i, 0, j)),
                 pl.BlockSpec((None, r, c_blk), lambda i, j: (i, 0, j)),
                 pl.BlockSpec((None, 1, r), lambda i, j: (i, 0, 0)),
                 pl.BlockSpec((None, t2, 1), lambda i, j: (i, 0, 0))]
    args += [b, a_src, dst_idx.reshape(n, 1, r), inv]

    out = pl.pallas_call(
        _merge_kernel if u > 0 else _merge_kernel_no_unm,
        grid=(n, n_cb),
        in_specs=in_specs,
        out_specs=pl.BlockSpec((None, u + t2, c_blk), lambda i, j: (i, 0, j)),
        out_shape=jax.ShapeDtypeStruct((n, u + t2, c), x.dtype),
        compiler_params=_compiler_params(("parallel", "parallel"),
                                         est2_bytes, vmem_cap),
    )(*args)
    return out


# ---------------------------------------------------------------------------
# Pure-JAX reference mirroring the PyTorch semantics.
# ---------------------------------------------------------------------------
def token_merging_ref(x, r):
    n, s, c = x.shape
    r = min(r, s // 2)
    if r <= 0:
        return x
    a = x[:, ::2, :]
    b = x[:, 1::2, :]
    scores = jnp.einsum('ntc,nsc->nts', a, b, precision='highest')
    node_max = scores.max(axis=-1)
    node_idx = scores.argmax(axis=-1)
    edge_idx = jnp.argsort(-node_max, axis=-1)
    unm_idx = edge_idx[:, r:]
    src_idx = edge_idx[:, :r]
    dst_idx = jnp.take_along_axis(node_idx, src_idx, axis=-1)
    unm = jnp.take_along_axis(a, unm_idx[..., None], axis=1)
    a_src = jnp.take_along_axis(a, src_idx[..., None], axis=1)
    t2 = b.shape[1]

    def per_batch(bb, aa, dd):
        sums = jnp.zeros_like(bb).at[dd].add(aa)
        cnts = jnp.zeros((t2,), bb.dtype).at[dd].add(1.0)
        return (bb + sums) / (1.0 + cnts[:, None])

    new_b = jax.vmap(per_batch)(b, a_src, dst_idx)
    return jnp.concatenate([unm, new_b], axis=1)


if __name__ == "__main__":
    key = jax.random.PRNGKey(0)
    n, s, c = 2, 16, 128
    r = 4
    x = jax.random.normal(key, (n, s, c), dtype=jnp.float32)

    out = jax.block_until_ready(token_merging(x, r))
    ref = token_merging_ref(x, r)

    assert out.shape == (n, s - r, c), out.shape
    assert jnp.allclose(out, ref, atol=1e-4, rtol=1e-4), "mismatch vs JAX reference"
    print("KERNEL_OK")
</pallas_src>

<mosaic_0001>
module attributes {stable_mosaic.version = 11 : i64} {
  func.func @_scores_kernel(%arg0: i32, %arg1: i32, %arg2: i32, %arg3: memref<1x8x128xf32, #tpu.memory_space<vmem>>, %arg4: memref<1x8x128xf32, #tpu.memory_space<vmem>>, %arg5: memref<1x1x8xf32, #tpu.memory_space<vmem>>, %arg6: memref<1x1x8xi32, #tpu.memory_space<vmem>>) attributes {dimension_semantics = [#tpu.dimension_semantics<parallel>, #tpu.dimension_semantics<parallel>, #tpu.dimension_semantics<arbitrary>], iteration_bounds = array<i64: 2, 1, 1>, scalar_prefetch = 0 : i64, scratch_operands = 0 : i64, tpu.core_type = #tpu.core_type<tc>, window_params = [{transform_indices = @transform_0, window_bounds = array<i64: 1, 8, 128>}, {transform_indices = @transform_1, window_bounds = array<i64: 1, 8, 128>}, {transform_indices = @transform_2, window_bounds = array<i64: 1, 1, 8>}, {transform_indices = @transform_3, window_bounds = array<i64: 1, 1, 8>}]} {
    %c0_i32 = arith.constant 0 : i32
    %0 = arith.cmpi eq, %arg2, %c0_i32 : i32
    %1 = arith.extui %0 : i1 to i32
    %c0_i32_0 = arith.constant 0 : i32
    %2 = arith.cmpi ne, %1, %c0_i32_0 : i32
    scf.if %2 {
      %cst_23 = arith.constant 0xFF800000 : f32
      %37 = vector.broadcast %cst_23 : f32 to vector<1x8xf32>
      %c0_24 = arith.constant 0 : index
      %c0_25 = arith.constant 0 : index
      %c0_26 = arith.constant 0 : index
      %38 = vector.load %arg5[%c0_24, %c0_25, %c0_26] : memref<1x1x8xf32, #tpu.memory_space<vmem>>, vector<1x1x8xf32>
      %39 = vector.shape_cast %38 : vector<1x1x8xf32> to vector<1x8xf32>
      %40 = vector.shape_cast %37 : vector<1x8xf32> to vector<1x1x8xf32>
      tpu.vector_store %arg5[%c0_24, %c0_25, %c0_26], %40 {strides = array<i32>} : memref<1x1x8xf32, #tpu.memory_space<vmem>>, vector<1x1x8xf32>,
      %c0_i32_27 = arith.constant 0 : i32
      %41 = vector.broadcast %c0_i32_27 : i32 to vector<1x8xi32>
      %c0_28 = arith.constant 0 : index
      %c0_29 = arith.constant 0 : index
      %c0_30 = arith.constant 0 : index
      %42 = vector.load %arg6[%c0_28, %c0_29, %c0_30] : memref<1x1x8xi32, #tpu.memory_space<vmem>>, vector<1x1x8xi32>
      %43 = vector.shape_cast %42 : vector<1x1x8xi32> to vector<1x8xi32>
      %44 = vector.shape_cast %41 : vector<1x8xi32> to vector<1x1x8xi32>
      tpu.vector_store %arg6[%c0_28, %c0_29, %c0_30], %44 {strides = array<i32>} : memref<1x1x8xi32, #tpu.memory_space<vmem>>, vector<1x1x8xi32>,
    } else {
    }
    %c0 = arith.constant 0 : index
    %c0_1 = arith.constant 0 : index
    %c0_2 = arith.constant 0 : index
    %3 = vector.load %arg3[%c0, %c0_1, %c0_2] : memref<1x8x128xf32, #tpu.memory_space<vmem>>, vector<1x8x128xf32>
    %4 = vector.shape_cast %3 : vector<1x8x128xf32> to vector<8x128xf32>
    %c0_3 = arith.constant 0 : index
    %c0_4 = arith.constant 0 : index
    %c0_5 = arith.constant 0 : index
    %5 = vector.load %arg4[%c0_3, %c0_4, %c0_5] : memref<1x8x128xf32, #tpu.memory_space<vmem>>, vector<1x8x128xf32>
    %6 = vector.shape_cast %5 : vector<1x8x128xf32> to vector<8x128xf32>
    %cst = arith.constant dense<0.000000e+00> : vector<8x8xf32>
    %7 = tpu.matmul %6, %4, %cst {dimension_numbers = #tpu.dot_dimension_numbers<[1], [1], [0], [0], [0, 0, 1, 0], [], []>} : vector<8x128xf32>, vector<8x128xf32>, vector<8x8xf32> -> vector<8x8xf32>
    %8 = tpu.iota {dimensions = array<i32: 0>} : vector<8x8xi32>
    %c8_i32 = arith.constant 8 : i32
    %9 = arith.muli %arg2, %c8_i32 : i32
    %10 = vector.broadcast %9 : i32 to vector<8x8xi32>
    %11 = arith.addi %8, %10 : vector<8x8xi32>
    %c8_i32_6 = arith.constant 8 : i32
    %12 = vector.broadcast %c8_i32_6 : i32 to vector<8x8xi32>
    %13 = arith.cmpi slt, %11, %12 : vector<8x8xi32>
    %cst_7 = arith.constant 0xFF800000 : f32
    %14 = vector.broadcast %cst_7 : f32 to vector<8x8xf32>
    %15 = arith.select %13, %7, %14 : vector<8x8xi1>, vector<8x8xf32>
    %cst_8 = arith.constant dense<0xFF800000> : vector<8xf32>
    %16 = vector.multi_reduction <maximumf>, %15, %cst_8 [0] : vector<8x8xf32> to vector<8xf32>
    %17 = vector.shape_cast %16 : vector<8xf32> to vector<1x8xf32>
    %18 = vector.broadcast %17 : vector<1x8xf32> to vector<8x8xf32>
    %19 = arith.cmpf oge, %15, %18 : vector<8x8xf32>
    %c8_i32_9 = arith.constant 8 : i32
    %20 = vector.broadcast %c8_i32_9 : i32 to vector<8x8xi32>
    %21 = arith.select %19, %11, %20 : vector<8x8xi1>, vector<8x8xi32>
    %cst_10 = arith.constant dense<2147483647> : vector<8xi32>
    %22 = vector.multi_reduction <minsi>, %21, %cst_10 [0] : vector<8x8xi32> to vector<8xi32>
    %23 = vector.shape_cast %22 : vector<8xi32> to vector<1x8xi32>
    %c0_11 = arith.constant 0 : index
    %c0_12 = arith.constant 0 : index
    %c0_13 = arith.constant 0 : index
    %24 = vector.load %arg5[%c0_11, %c0_12, %c0_13] : memref<1x1x8xf32, #tpu.memory_space<vmem>>, vector<1x1x8xf32>
    %25 = vector.shape_cast %24 : vector<1x1x8xf32> to vector<1x8xf32>
    %26 = arith.cmpf ogt, %17, %25 : vector<1x8xf32>
    %27 = arith.select %26, %17, %25 : vector<1x8xi1>, vector<1x8xf32>
    %c0_14 = arith.constant 0 : index
    %c0_15 = arith.constant 0 : index
    %c0_16 = arith.constant 0 : index
    %28 = vector.load %arg5[%c0_14, %c0_15, %c0_16] : memref<1x1x8xf32, #tpu.memory_space<vmem>>, vector<1x1x8xf32>
    %29 = vector.shape_cast %28 : vector<1x1x8xf32> to vector<1x8xf32>
    %30 = vector.shape_cast %27 : vector<1x8xf32> to vector<1x1x8xf32>
    tpu.vector_store %arg5[%c0_14, %c0_15, %c0_16], %30 {strides = array<i32>} : memref<1x1x8xf32, #tpu.memory_space<vmem>>, vector<1x1x8xf32>,
    %c0_17 = arith.constant 0 : index
    %c0_18 = arith.constant 0 : index
    %c0_19 = arith.constant 0 : index
    %31 = vector.load %arg6[%c0_17, %c0_18, %c0_19] : memref<1x1x8xi32, #tpu.memory_space<vmem>>, vector<1x1x8xi32>
    %32 = vector.shape_cast %31 : vector<1x1x8xi32> to vector<1x8xi32>
    %33 = arith.select %26, %23, %32 : vector<1x8xi1>, vector<1x8xi32>
    %c0_20 = arith.constant 0 : index
    %c0_21 = arith.constant 0 : index
    %c0_22 = arith.constant 0 : index
    %34 = vector.load %arg6[%c0_20, %c0_21, %c0_22] : memref<1x1x8xi32, #tpu.memory_space<vmem>>, vector<1x1x8xi32>
    %35 = vector.shape_cast %34 : vector<1x1x8xi32> to vector<1x8xi32>
    %36 = vector.shape_cast %33 : vector<1x8xi32> to vector<1x1x8xi32>
    tpu.vector_store %arg6[%c0_20, %c0_21, %c0_22], %36 {strides = array<i32>} : memref<1x1x8xi32, #tpu.memory_space<vmem>>, vector<1x1x8xi32>,
    return
  }
  func.func @transform_0(%arg0: i32, %arg1: i32, %arg2: i32) -> (i32, i32, i32) {
    %c0_i32 = arith.constant 0 : i32
    %c0_i32_0 = arith.constant 0 : i32
    return %arg0, %arg1, %c0_i32 : i32, i32, i32
  }
  func.func @transform_1(%arg0: i32, %arg1: i32, %arg2: i32) -> (i32, i32, i32) {
    %c0_i32 = arith.constant 0 : i32
    %c0_i32_0 = arith.constant 0 : i32
    return %arg0, %c0_i32, %arg2 : i32, i32, i32
  }
  func.func @transform_2(%arg0: i32, %arg1: i32, %arg2: i32) -> (i32, i32, i32) {
    %c0_i32 = arith.constant 0 : i32
    %c0_i32_0 = arith.constant 0 : i32
    return %arg0, %c0_i32, %arg1 : i32, i32, i32
  }
  func.func @transform_3(%arg0: i32, %arg1: i32, %arg2: i32) -> (i32, i32, i32) {
    %c0_i32 = arith.constant 0 : i32
    %c0_i32_0 = arith.constant 0 : i32
    return %arg0, %c0_i32, %arg1 : i32, i32, i32
  }
}

</mosaic_0001>

<bundles_post_ra>
// kernel: tpu_custom_call.1
= control target key start
LH: loop header
LB: loop body
LE: loop exit
PB: predicated region body
PF: predicated region fallthrough
CT: control target
= control target key end

     0   :  { %9 = vsyncpa [#allocation3], 0  ;;  %s1114_s0 = inlined_call_operand.hbm [shape: f32[2,8,128], index: 0, kind: input, shape index: {}]   ;;  %s1115_s1 = inlined_call_operand.hbm [shape: f32[2,8,128], index: 1, kind: input, shape index: {}]   ;;  %s1116_s2 = inlined_call_operand.hbm [shape: f32[2,1,8], index: 2, kind: output, shape index: {0}]   ;;  %s1117_s3 = inlined_call_operand.hbm [shape: s32[2,1,8], index: 3, kind: output, shape index: {1}]  }
   0x1   :  { %11 = vsyncpa [#allocation3 + $0x1], 0 }
   0x2   :  { %12 = vsyncpa [#allocation6], 0 }
   0x3   :  { %14 = vsyncpa [#allocation6 + $0x1], 0 }
   0x4   :  { %15 = vsyncpa [#allocation4], 0 }
   0x5   :  { %17 = vsyncpa [#allocation4 + $0x1], 0 }
   0x6   :  { %18 = vsyncpa [#allocation9], 0 }
   0x7   :  { %20 = vsyncpa [#allocation9 + $0x1], 0  ;;  %s845_s12 = smov 0   ;;  %s847_s13 = smov 0  }
   0x8   :  { %s849_s14 = smov 0   ;;  %s851_s15 = smov 0  }
   0x9   :  { %s853_s16 = smov 0   ;;  %s855_s17 = smov 0  }
   0xa LB: > { %s539_s18 = sadd.s32 4294967295, %s815_s17   ;;  %s540_s19 = sadd.s32 4294967294, %s815_s17   ;;  %s815_s17 = sphi %s855_s17, %s26_s17   ;;  %s811_s16 = sphi %s853_s16, %s1137_s16   ;;  %s807_s15 = sphi %s851_s15, %s1136_s15   ;;  %s803_s14 = sphi %s849_s14, %s1135_s14   ;;  %s799_s13 = sphi %s847_s13, %s1134_s13   ;;  %s795_s12 = sphi %s845_s12, %s1133_s12  }
   0xb   : > { %s45_s20 = sadd.s32 1, %s811_s16  ;;  %s54_s21 = sadd.s32 1, %s803_s14 }
   0xc   : > { %p47_p0 = scmp.ge.s32.totalorder %s45_s20, 2  ;;  %p61_p1 = scmp.ne.s32.totalorder %s803_s14, %s799_s13 }
   0xd   : > { %p62_p2 = scmp.eq.s32.totalorder %s815_s17, 0  ;;  %p67_p3 = scmp.ne.s32.totalorder %s799_s13, %s795_s12 }
   0xe   : > { %s1139_s20 = smov (%p47_p0, %s45_s20), 0  ;;  %p68_p5 = scmp.eq.s32.totalorder %s539_s18, 0 }
   0xf   : > { %p886_p4 = por %p62_p2, %p61_p1  ;;  %s49_s23 = ssub.s32 %s811_s16, %s1139_s20 }
  0x10   : > { %p121_p6 = scmp.eq.s32.totalorder %s539_s18, 1  ;;  %p52_p7 = scmp.eq.s32.totalorder %s49_s23, 0 }
  0x11   : > { %p892_p8 = por %p68_p5, %p67_p3  ;;  %p127_p10 = scmp.eq.s32.totalorder %s540_s19, 1 }
  0x12   : > { %p896_p9 = por %p121_p6, %p61_p1  ;;  %p583_p13 = scmp.lt.s32.totalorder %s815_s17, 2 }
  0x13   : > { %s1121_s24 = scalar_select %p892_p8, 1, 0 }
  0x14   : > { %s1122_s25 = scalar_select %p896_p9, 1, 0 }
  0x15   : > { %s901_s26 = scalar_select %p52_p7, %s803_s14, %s54_s21  }
  0x16   : > { %p903_p11 = por %p127_p10, %p67_p3  ;;  %s910_s28 = sand.u32 1, %s803_s14  }
  0x17   : > { %s543_s29 = sshll.u32 %s910_s28, 3  ;;  %s544_s30 = sshll.u32 %s811_s16, 7 }
  0x18   : > { %s1123_s27 = scalar_select %p903_p11, 1, 0 }
  0x19   : > { %s919_s6 = scalar_lea.hbm %s1114_s0, %s544_s30  ;;  %s179_s7 = scalar_lea.vmem [#allocation2], %s543_s29 }
  0x1a   : > { %s187_s8 = sshll.u32 %s179_s7, 4  ;;  %p927_p0 = pnand %p583_p13, %p886_p4  ;;  %s923_s8 = int_to_ptr.vmem [resolvable:$true] %s187_s8 }
  0x1b   : > { %s176_s10 = scalar_lea.sflag [#allocation3], %s910_s28  ;;  %s637_s11 = scalar_lea.hbm %s919_s6, 128 }
  0x1c   : > { %p638_p3 = scmp.ne.s32.totalorder %s919_s6, %s637_s11  ;;  %p639_p5 = pneg %p927_p0 }
  0x1d   : > { %s642_s21 = scalar_lea.hbm %s1114_s0, 256  ;;  %p643_p4 = scmp.lt.u32.totalorder %s919_s6, %s1114_s0 }
  0x1e   : > { %p640_p6 = pnand %p639_p5, %p638_p3  ;;  %p644_p10 = scmp.lt.u32.totalorder %s642_s21, %s637_s11 }
  0x1f   : > { %p646_p12 = scmp.lt.u32.totalorder %s637_s11, %s919_s6 }
  0x20   : > { %p641_p7 = pneg %p640_p6  ;;  %p645_p13 = por %p644_p10, %p643_p4 }
  0x22   : > { %p647_p1 = por %p646_p12, %p645_p13 }
  0x24   : > { %p648_p2 = pnand %p647_p1, %p641_p7 }
  0x26   : > { %651 = shalt.err (!%p648_p2)
}
  0x27   : > { %s652_s4 = scalar_lea.vmem %s923_s8, 128  ;;  %s817_s5 = smov [#allocation2]  }
  0x28   : > { %p653_p3 = scmp.ne.s32.totalorder %s923_s8, %s652_s4  ;;  %s657_s7 = sshll.u32 %s817_s5, 4  ;;  %s658_s7 = int_to_ptr.vmem [resolvable:$false] %s657_s7 }
  0x29   : > { %s659_s18 = scalar_lea.vmem %s658_s7, 256  ;;  %p660_p9 = scmp.lt.s32.totalorder %s923_s8, %s658_s7 }
  0x2a   : > { %p655_p6 = pnand %p653_p3, %p639_p5  ;;  %p661_p4 = scmp.lt.s32.totalorder %s659_s18, %s652_s4 }
  0x2c   : > { %p656_p11 = pneg %p655_p6  ;;  %p662_p10 = por %p661_p4, %p660_p9 }
  0x2e   : > { %p663_p12 = pnand %p662_p10, %p656_p11 }
  0x30   : > { %666 = shalt.err (!%p663_p12)
}
  0x31   : > { %572 = dma.hbm_to_vmem [thread:$0]  (!%p927_p0), %s919_s6, 128, %s923_s8, %s176_s10  }
  0x32   : > { %p1125_p1 = scmp.lt.s32.totalorder %s815_s17, 3  ;;  %p1126_p2 = scmp.ge.s32.totalorder %s815_s17, 1 }
  0x33   : > { %s972_s22 = scalar_lea.hbm %s1115_s1, %s544_s30  ;;  %s198_s23 = scalar_lea.vmem [#allocation5], %s543_s29 }
  0x34   : > { %p963_p7 = pnand %p1126_p2, %p1125_p1  ;;  %s206_s4 = sshll.u32 %s198_s23, 4  ;;  %s207_s4 = int_to_ptr.vmem [resolvable:$true] %s206_s4 }
  0x35   : > { %s195_s6 = scalar_lea.sflag [#allocation6], %s910_s28  ;;  %s667_s8 = scalar_lea.hbm %s972_s22, 128 }
  0x36   : > { %s1127_s11 = scalar_select %p963_p7, 1, 0 }
  0x37   : > { %p668_p9 = scmp.ne.s32.totalorder %s972_s22, %s667_s8  ;;  %s672_s30 = scalar_lea.hbm %s1115_s1, 256 }
  0x38   : > { %p673_p3 = scmp.lt.u32.totalorder %s972_s22, %s1115_s1  ;;  %p674_p6 = scmp.lt.u32.totalorder %s672_s30, %s667_s8 }
  0x39   : > { %p670_p11 = pnand %p668_p9, %p639_p5  ;;  %p676_p10 = scmp.lt.u32.totalorder %s667_s8, %s972_s22 }
  0x3a   : > { %p675_p4 = por %p674_p6, %p673_p3 }
  0x3b   : > { %p671_p13 = pneg %p670_p11 }
  0x3c   : > { %p677_p12 = por %p676_p10, %p675_p4 }
  0x3e   : > { %p678_p1 = pnand %p677_p12, %p671_p13 }
  0x40   : > { %681 = shalt.err (!%p678_p1)
}
  0x41   : > { %s682_s28 = scalar_lea.vmem %s207_s4, 128  ;;  %s818_s29 = smov [#allocation5]  }
  0x42   : > { %p683_p2 = scmp.ne.s32.totalorder %s207_s4, %s682_s28  ;;  %s687_s19 = sshll.u32 %s818_s29, 4  ;;  %s688_s19 = int_to_ptr.vmem [resolvable:$false] %s687_s19 }
  0x43   : > { %s689_s21 = scalar_lea.vmem %s688_s19, 256  ;;  %p690_p8 = scmp.lt.s32.totalorder %s207_s4, %s688_s19 }
  0x44   : > { %p685_p9 = pnand %p683_p2, %p639_p5  ;;  %p691_p7 = scmp.lt.s32.totalorder %s689_s21, %s682_s28 }
  0x46   : > { %p686_p11 = pneg %p685_p9  ;;  %p692_p3 = por %p691_p7, %p690_p8 }
  0x48   : > { %p693_p6 = pnand %p692_p3, %p686_p11 }
  0x4a   : > { %696 = shalt.err (!%p693_p6)
}
  0x4b   : > { %575 = dma.hbm_to_vmem [thread:$0]  (!%p927_p0), %s972_s22, 128, %s207_s4, %s195_s6  }
  0x4c   : > { %p1128_p13 = scmp.ne.s32.totalorder %s1127_s11, 0 }
  0x4d   : > { %s999_s23 = sand.u32 (!%p1128_p13), 1, %s799_s13   ;;  %p1129_p5 = scmp.ne.s32.totalorder (!%p1128_p13), %s1121_s24, 0 }
  0x4e   : > { %215 = sbr.rel (%p1128_p13) target bundleno = 359 (0x167), region = 28  ;;  %s548_s8 = sshll.u32 (!%p1128_p13), %s999_s23, 3 }
  0x4f   : > { %s218_s10 = scalar_lea.sflag (!%p1128_p13), [#allocation3], %s999_s23  ;;  %s221_s5 = scalar_lea.vmem (!%p1128_p13), [#allocation2], %s548_s8 }
  0x55   : > { %778 = dma.done.wait (%p1129_p5), %s218_s10, 128  }
  0x56   : > { %780 = vsyncadd (%p1129_p5), %s218_s10, 4294967168  ;;  %s227_s9 = scalar_lea.sflag [#allocation6], %s999_s23  ;;  %s230_s22 = scalar_lea.vmem [#allocation5], %s548_s8 }
  0x57   : > { %782 = dma.done.wait (%p1129_p5), %s227_s9, 128  }
  0x58   : > { %784 = vsyncadd (%p1129_p5), %s227_s9, 4294967168  ;;  %v819_v0 = vmov 0.0   ;;  %vm820_vm0 = vmmov 0   ;;  %v268_v1 = vld [vmem:[%s221_s5] sm:$0xff]  ;;  %v269_v2 = vld [vmem:[%s230_s22] sm:$0xff]  ;;  %vm265_vm1 = vcmask 57344   ;;  %v340_v11 = vlaneseq }
  0x59   : > { %556 = vmatprep.subr.mxu0 %v819_v0  ;;  %558 = vmatprep.mubr.msk.f32.mxu0 %vm820_vm0, %v819_v0  ;;  %s254_s11 = scalar_lea.vmem [#allocation7], %s999_s23  ;;  %v821_v3 = vmov -inf   ;;  %s1015_s4 = scalar_lea.vmem [#allocation8], %s999_s23  ;;  %v822_v4 = vmov 0   ;;  %vm347_vm2 = vcmask 64512  }
  0x5a   : > { %557 = vmatpush3.xpose.msra.mxu0 %v268_v1  ;;  %266 = vst.msk [vmem:[%s254_s11] sm:$0x1] %vm265_vm1, %v821_v3  ;;  %267 = vst.msk [vmem:[%s1015_s4] sm:$0x1] %vm265_vm1, %v822_v4  ;;  %v341_v14 = vshrl.u32 %v340_v11, 7  ;;  %s550_s24 = sshll.u32 %s807_s15, 4 }
  0x5b   : > { %s393_s6 = sshll.u32 %s254_s11, 4  ;;  %s1026_s18 = scalar_lea.hbm %s1116_s2, %s550_s24  ;;  %s1028_s6 = int_to_ptr.vmem [resolvable:$true] %s393_s6 }
  0x5c   : > { %s376_s28 = scalar_lea.sflag [#allocation4], %s999_s23  ;;  %s697_s29 = scalar_lea.vmem %s1028_s6, 16 }
  0x5d   : > { %559 = vmatmul.mubr.f32.vlgmr.msra.gmra.mrb[0].mxu0 %v269_v2  ;;  %p698_p8 = scmp.ne.s32.totalorder %s1028_s6, %s697_s29  ;;  %p1130_p0 = scmp.ne.s32.totalorder %s1122_s25, 0 }
  0x5e   : > { %s823_s19 = smov [#allocation7]  }
  0x5f   : > { %p699_p7 = pnand %p698_p8, %p1130_p0  ;;  %s701_s21 = sshll.u32 %s823_s19, 4  ;;  %s702_s21 = int_to_ptr.vmem [resolvable:$false] %s701_s21 }
  0x60   : > { %s703_s8 = scalar_lea.vmem %s702_s21, 32  ;;  %p704_p10 = scmp.lt.s32.totalorder %s1028_s6, %s702_s21 }
  0x61   : > { %v367_v15 = vld [vmem:[%s254_s11] sm:$0x1]  ;;  %p700_p4 = pneg %p699_p7  ;;  %p705_p12 = scmp.lt.s32.totalorder %s703_s8, %s697_s29 }
  0x63   : > { %p706_p1 = por %p705_p12, %p704_p10 }
  0x65   : > { %p707_p2 = pnand %p706_p1, %p700_p4 }
 0x130   : > { %v336_v5 = vpop.f32.mrb[0].mxu0 }
 0x131   : > { %v348_v6 = vsel %vm347_vm2, %v336_v5, -inf  ;;  %v560_v7 = vpop.f32.mrb[1].mxu0 }
 0x132   : > { %v349_v8 = vrot.slane %v348_v6, 4 }
 0x134   : > { %v350_v9 = vmax.f32 %v348_v6, %v349_v8 }
 0x136   : > { %v351_v10 = vrot.slane %v350_v9, 2 }
 0x138   : > { %v352_v12 = vmax.f32 %v350_v9, %v351_v10 }
 0x13a   : > { %v353_v13 = vrot.slane %v352_v12, 1 }
 0x13c   : > { %v354_v16 = vmax.f32 %v352_v12, %v353_v13 }
 0x13e   : > { %vm355_vm3 = vcmp.ge.f32.partialorder %v336_v5, %v354_v16  ;;  %vm368_vm4 = vcmp.gt.f32.partialorder %v354_v16, %v367_v15 }
 0x13f   : > { %v356_v17 = vsel %vm355_vm3, %v341_v14, 8  ;;  %v369_v18 = vsel %vm368_vm4, %v354_v16, %v367_v15 }
 0x140   : > { %v357_v19 = vsel %vm347_vm2, %v356_v17, 2147483647  ;;  %371 = vst.msk [vmem:[%s254_s11] sm:$0x1] %vm265_vm1, %v369_v18 }
 0x141   : > { %v358_v20 = vrot.slane %v357_v19, 4 }
 0x142   : > { %710 = shalt.err (!%p707_p2)
}
 0x143   : > { %s711_s10 = scalar_lea.hbm %s1026_s18, 16  ;;  %s715_s22 = scalar_lea.hbm %s1116_s2, 32 }
 0x144   : > { %p712_p9 = scmp.ne.s32.totalorder %s1026_s18, %s711_s10  ;;  %p716_p6 = scmp.lt.u32.totalorder %s1026_s18, %s1116_s2 }
 0x145   : > { %p717_p13 = scmp.lt.u32.totalorder %s715_s22, %s711_s10  ;;  %p719_p8 = scmp.lt.u32.totalorder %s711_s10, %s1026_s18 }
 0x146   : > { %p713_p11 = pnand %p712_p9, %p1130_p0 }
 0x147   : > { %p718_p5 = por %p717_p13, %p716_p6 }
 0x148   : > { %p714_p3 = pneg %p713_p11 }
 0x149   : > { %p720_p7 = por %p719_p8, %p718_p5 }
 0x14b   : > { %p721_p4 = pnand %p720_p7, %p714_p3 }
 0x14d   : > { %724 = shalt.err (!%p721_p4)
}
 0x14e   : > { %565 = dma.vmem_to_hbm [thread:$0]  (%p1130_p0), %s1028_s6, 16, %s1026_s18, %s376_s28   ;;  %vm359_vm5 = vcmp.lt.s32.totalorder %v357_v19, %v358_v20  ;;  %v372_v25 = vld [vmem:[%s1015_s4] sm:$0x1] }
 0x14f   : > { %v360_v21 = vsel %vm359_vm5, %v357_v19, %v358_v20  ;;  %s407_s7 = sshll.u32 %s1015_s4, 4  ;;  %s1062_s21 = scalar_lea.hbm %s1117_s3, %s550_s24  ;;  %s1064_s7 = int_to_ptr.vmem [resolvable:$true] %s407_s7 }
 0x150   : > { %v361_v22 = vrot.slane %v360_v21, 2  ;;  %s380_s6 = scalar_lea.sflag [#allocation9], %s999_s23  ;;  %s725_s18 = scalar_lea.vmem %s1064_s7, 16 }
 0x151   : > { %p726_p10 = scmp.ne.s32.totalorder %s1064_s7, %s725_s18  ;;  %s824_s15 = smov [#allocation8]  }
 0x152   : > { %vm362_vm6 = vcmp.lt.s32.totalorder %v360_v21, %v361_v22  ;;  %s729_s28 = sshll.u32 %s824_s15, 4  ;;  %s730_s28 = int_to_ptr.vmem [resolvable:$false] %s729_s28 }
 0x153   : > { %v363_v23 = vsel %vm362_vm6, %v360_v21, %v361_v22  ;;  %p727_p12 = pnand %p726_p10, %p1130_p0  ;;  %s731_s24 = scalar_lea.vmem %s730_s28, 32 }
 0x154   : > { %v364_v24 = vrot.slane %v363_v23, 1  ;;  %p732_p2 = scmp.lt.s32.totalorder %s1064_s7, %s730_s28  ;;  %p733_p9 = scmp.lt.s32.totalorder %s731_s24, %s725_s18 }
 0x155   : > { %p728_p1 = pneg %p727_p12 }
 0x156   : > { %vm365_vm7 = vcmp.lt.s32.totalorder %v363_v23, %v364_v24  ;;  %p734_p11 = por %p733_p9, %p732_p2 }
 0x157   : > { %v366_v26 = vsel %vm365_vm7, %v363_v23, %v364_v24 }
 0x158   : > { %v373_v27 = vsel %vm368_vm4, %v366_v26, %v372_v25  ;;  %p735_p3 = pnand %p734_p11, %p728_p1 }
 0x159   : > { %374 = vst.msk [vmem:[%s1015_s4] sm:$0x1] %vm265_vm1, %v373_v27 }
 0x15a   : > { %738 = shalt.err (!%p735_p3)
}
 0x15b   : > { %s739_s23 = scalar_lea.hbm %s1062_s21, 16  ;;  %s743_s10 = scalar_lea.hbm %s1117_s3, 32 }
 0x15c   : > { %p740_p6 = scmp.ne.s32.totalorder %s1062_s21, %s739_s23  ;;  %p744_p8 = scmp.lt.u32.totalorder %s1062_s21, %s1117_s3 }
 0x15d   : > { %p745_p7 = scmp.lt.u32.totalorder %s743_s10, %s739_s23  ;;  %p747_p10 = scmp.lt.u32.totalorder %s739_s23, %s1062_s21 }
 0x15e   : > { %p741_p13 = pnand %p740_p6, %p1130_p0 }
 0x15f   : > { %p746_p4 = por %p745_p7, %p744_p8 }
 0x160   : > { %p742_p5 = pneg %p741_p13 }
 0x161   : > { %p748_p12 = por %p747_p10, %p746_p4 }
 0x163   : > { %p749_p1 = pnand %p748_p12, %p742_p5 }
 0x165   : > { %752 = shalt.err (!%p749_p1)
}
 0x166   : > { %566 = dma.vmem_to_hbm [thread:$0]  (%p1130_p0), %s1064_s7, 16, %s1062_s21, %s380_s6  }
 0x167 PF: > { %s419_s22 = sand.u32 1, %s795_s12   ;;  %p1131_p2 = scmp.ne.s32.totalorder %s1123_s27, 0 }
 0x168   : > { %p1132_p9 = scmp.ge.s32.totalorder %s815_s17, 2  ;;  %s420_s11 = scalar_lea.sflag [#allocation4], %s419_s22 }
 0x16a   : > { %p577_p11 = pnand %p1132_p9, %p1131_p2 }
 0x16c   : > { %786 = dma.done.wait (!%p577_p11), %s420_s11, 16  }
 0x16d   : > { %788 = vsyncadd (!%p577_p11), %s420_s11, 4294967280  ;;  %s428_s30 = scalar_lea.sflag [#allocation9], %s419_s22 }
 0x16e   : > { %790 = dma.done.wait (!%p577_p11), %s428_s30, 16  }
 0x16f   : > { %792 = vsyncadd (!%p577_p11), %s428_s30, 4294967280  ;;  %s26_s17 = sadd.s32 1, %s815_s17   ;;  %s1133_s12 = smov %s799_s13 }
 0x170   : > { %p23_p3 = scmp.ge.s32.totalorder %s26_s17, 4   ;;  %s1134_s13 = smov %s803_s14 }
 0x171   : > { %s1135_s14 = smov %s901_s26  ;;  %s1136_s15 = smov %s811_s16 }
 0x172   : > { %s1137_s16 = smov %s1139_s20  ;;  %25 = sbr.rel (!%p23_p3) target bundleno = 10 (0xa), region = 107 }
 0x179   :  { %432 = vsyncpa [#allocation3], 1 }
 0x17a   :  { %434 = vsyncpa [#allocation3 + $0x1], 1 }
 0x17b   :  { %435 = vsyncpa [#allocation6], 1 }
 0x17c   :  { %437 = vsyncpa [#allocation6 + $0x1], 1 }
 0x17d   :  { %438 = vsyncpa [#allocation4], 1 }
 0x17e   :  { %440 = vsyncpa [#allocation4 + $0x1], 1 }
 0x17f   :  { %441 = vsyncpa [#allocation9], 1 }
 0x180   :  { %443 = vsyncpa [#allocation9 + $0x1], 1 }

</bundles_post_ra>
